<compile_context>
chip_gen: v5e
topology: v5e:2x2
jax: 0.10.0
libtpu: 0.0.40
codegen_flags: <defaults>
</compile_context>

<pallas_src>
import jax
import jax.numpy as jnp
from jax.experimental import pallas as pl
from jax.experimental.pallas import tpu as pltpu

_LANES = 128
_PAD_LOGIT = -1.0e4   # bce_with_logits(x=-1e4, y=0) == 0 exactly in f32


def _round_up(n, m):
    return ((n + m - 1) // m) * m


# ----------------------------------------------------------------------------
# Fused kernel: weighted mean BCE-with-logits over all stages at once.
# ----------------------------------------------------------------------------
def _wbce_sum_kernel(pred_ref, tgt_ref, coef_ref, out_ref):
    """out[0,0] += sum(coef_row * bce_with_logits(pred, tgt)) for this row tile."""
    @pl.when(pl.program_id(0) == 0)
    def _():
        out_ref[0, 0] = jnp.float32(0.0)

    x = pred_ref[...].astype(jnp.float32)       # (TR, 128) lane-dense
    y = tgt_ref[...].astype(jnp.float32)        # (TR, 128)
    c = coef_ref[...].astype(jnp.float32)       # (TR, 1) -> broadcast over lanes
    # Numerically stable BCE-with-logits (PyTorch formulation, log1p variant).
    bce = jnp.maximum(x, 0.0) - x * y + jnp.log1p(jnp.exp(-jnp.abs(x)))
    out_ref[0, 0] += jnp.sum(bce * c)


def _fused_weighted_bce(pred_rows, tgt_rows, coef_rows):
    """pred/tgt: (R,128); coef: (R,1).  Returns sum(coef * bce) as a scalar."""
    R = pred_rows.shape[0]
    # Row tile: single step for small problems, 512-row tiles at scale.
    if R <= 1024:
        tr = _round_up(R, 8)
    else:
        tr = 512
    r_pad = _round_up(R, tr)
    if r_pad != R:
        pad = r_pad - R
        pred_rows = jnp.pad(pred_rows, ((0, pad), (0, 0)),
                            constant_values=_PAD_LOGIT)
        tgt_rows = jnp.pad(tgt_rows, ((0, pad), (0, 0)))
        coef_rows = jnp.pad(coef_rows, ((0, pad), (0, 0)))

    out = pl.pallas_call(
        _wbce_sum_kernel,
        out_shape=jax.ShapeDtypeStruct((1, 1), jnp.float32),
        grid=(r_pad // tr,),
        in_specs=[
            pl.BlockSpec((tr, _LANES), lambda i: (i, 0)),
            pl.BlockSpec((tr, _LANES), lambda i: (i, 0)),
            pl.BlockSpec((tr, 1), lambda i: (i, 0)),
        ],
        out_specs=pl.BlockSpec(memory_space=pltpu.MemorySpace.SMEM),
        compiler_params=pltpu.CompilerParams(
            dimension_semantics=("arbitrary",)),
    )(pred_rows, tgt_rows, coef_rows)
    return out[0, 0]


# ----------------------------------------------------------------------------
# Layout glue (pure permutations) in plain JAX.
# ----------------------------------------------------------------------------
def pixel_shuffle(x, r):
    if r == 1:
        return x
    B, C, H, W = x.shape
    co = C // (r * r)
    x = x.reshape(B, co, r, r, H, W)
    x = jnp.transpose(x, (0, 1, 4, 2, 5, 3))
    return x.reshape(B, co, H * r, W * r)


def pixel_unshuffle(x, r):
    if r == 1:
        return x
    B, C, H, W = x.shape
    h, w = H // r, W // r
    x = x.reshape(B, C, h, r, w, r)
    x = jnp.transpose(x, (0, 1, 3, 5, 2, 4))
    return x.reshape(B, C * r * r, h, w)


def _to_rows(x, pad_value):
    """Flatten to 1D, pad to a multiple of 128, reshape lane-dense (rows, 128)."""
    flat = jnp.ravel(x)
    n = flat.shape[0]
    n_pad = _round_up(n, _LANES)
    if n_pad != n:
        flat = jnp.pad(flat, (0, n_pad - n), constant_values=pad_value)
    return flat.reshape(n_pad // _LANES, _LANES)


def wbce_loss(outputs, targets,
              weights=(1.0, 0.5, 0.7, 0.9, 1.1),
              bce_weight=0.5, dice_weight=0.5):
    """wBCELoss.forward(outputs, targets).  targets: (B, H, W)."""
    # Only the (default) bce_weight != 0 path is exercised; the bce_weight == 0
    # branch calls self.dice_loss which the reference module never defines.
    # TODO(synk): per-stage `.item()` logging (host sync) is intentionally skipped.
    del bce_weight, dice_weight

    target = (targets[:, None, :, :] > 0.5).astype(jnp.float32)     # (B,1,H,W)

    pred_rows, tgt_rows, coef_rows = [], [], []
    target_ = None
    for count, (sal_pred, wght) in enumerate(zip(outputs, weights)):
        scale = targets.shape[-1] // sal_pred.shape[-1]
        if count == 0:
            sp = jnp.max(pixel_shuffle(sal_pred, scale), axis=1)     # (B,H,W)
            stage_pred, stage_tgt = sp, target[:, 0]
        else:
            if scale > 1:
                target_ = pixel_unshuffle(target, scale)
            # Like PyTorch, a scale==1 stage reuses the previous target_.
            stage_pred, stage_tgt = sal_pred, target_

        n = stage_pred.size
        pred_rows.append(_to_rows(stage_pred, _PAD_LOGIT))
        tgt_rows.append(_to_rows(stage_tgt, 0.0))
        coef_rows.append(jnp.full((pred_rows[-1].shape[0], 1),
                                  float(wght) / float(n), dtype=jnp.float32))

    pred_rows = jnp.concatenate(pred_rows, axis=0)
    tgt_rows = jnp.concatenate(tgt_rows, axis=0)
    coef_rows = jnp.concatenate(coef_rows, axis=0)
    return _fused_weighted_bce(pred_rows, tgt_rows, coef_rows)


# ----------------------------------------------------------------------------
# Pure-JAX reference that keeps the full (cancelling) weit / avg_pool path,
# used only for the correctness check in __main__.
# ----------------------------------------------------------------------------
def _bce_logits_ref(x, y):
    return jnp.maximum(x, 0.0) - x * y + jnp.log1p(jnp.exp(-jnp.abs(x)))


def _structure_loss_ref(pred, mask):
    # avg_pool2d(mask, 31, stride=1, padding=15), count_include_pad=True
    mpad = jnp.pad(mask, ((0, 0), (0, 0), (15, 15), (15, 15)))
    pooled = jax.lax.reduce_window(mpad, 0.0, jax.lax.add,
                                   (1, 1, 31, 31), (1, 1, 1, 1),
                                   'VALID') / 961.0
    weit = 1.0 + 4.0 * jnp.abs(pooled - mask)
    # reduce='none' is legacy-truthy -> reduction='mean' -> scalar
    wbce = jnp.mean(_bce_logits_ref(pred, mask))
    num = jnp.sum(weit * wbce, axis=(2, 3))
    den = jnp.sum(weit, axis=(2, 3))
    return jnp.mean(num / den)


def _wbce_loss_ref(outputs, targets, weights=(1.0, 0.5, 0.7, 0.9, 1.1)):
    target = (targets[:, None, :, :] > 0.5).astype(jnp.float32)
    loss = jnp.float32(0.0)
    target_ = None
    for count, (sal_pred, wght) in enumerate(zip(outputs, weights)):
        scale = targets.shape[-1] // sal_pred.shape[-1]
        if count == 0:
            sp = jnp.max(pixel_shuffle(sal_pred, scale), axis=1, keepdims=True)
            stage = jnp.mean(_bce_logits_ref(sp, target))
        else:
            if scale > 1:
                target_ = pixel_unshuffle(target, scale)
            stage = _structure_loss_ref(sal_pred, target_)
        loss = loss + jnp.float32(wght) * stage
    return loss


# ----------------------------------------------------------------------------
if __name__ == "__main__":
    key = jax.random.PRNGKey(0)
    k0, k1, k2, k3, k4, kt = jax.random.split(key, 6)

    B, H, W = 2, 16, 16
    # Multi-scale decoder outputs (NCHW); channel counts match pixel_(un)shuffle.
    outputs = [
        jax.random.normal(k0, (B, 8, 8, 8), dtype=jnp.float32),    # stage0, scale 2
        jax.random.normal(k1, (B, 4, 8, 8), dtype=jnp.float32),    # scale 2
        jax.random.normal(k2, (B, 16, 4, 4), dtype=jnp.float32),   # scale 4
        jax.random.normal(k3, (B, 16, 4, 4), dtype=jnp.float32),   # scale 4
        jax.random.normal(k4, (B, 64, 2, 2), dtype=jnp.float32),   # scale 8
    ]
    targets = jax.random.uniform(kt, (B, H, W), dtype=jnp.float32)

    loss = jax.jit(wbce_loss)(outputs, targets)
    jax.block_until_ready(loss)

    ref = _wbce_loss_ref(outputs, targets)
    assert loss.shape == () and bool(jnp.isfinite(loss))
    assert jnp.allclose(loss, ref, rtol=1e-5, atol=1e-6), (loss, ref)
    print("KERNEL_OK")
</pallas_src>

<mosaic_0001>
module attributes {stable_mosaic.version = 11 : i64} {
  func.func @_wbce_sum_kernel(%arg0: i32, %arg1: memref<24x128xf32, #tpu.memory_space<vmem>>, %arg2: memref<24x128xf32, #tpu.memory_space<vmem>>, %arg3: memref<24x1xf32, #tpu.memory_space<vmem>>, %arg4: memref<1x1xf32, #tpu.memory_space<smem>>) attributes {dimension_semantics = [#tpu.dimension_semantics<arbitrary>], iteration_bounds = array<i64: 1>, scalar_prefetch = 0 : i64, scratch_operands = 0 : i64, tpu.core_type = #tpu.core_type<tc>, window_params = [{transform_indices = @transform_0, window_bounds = array<i64: 24, 128>}, {transform_indices = @transform_1, window_bounds = array<i64: 24, 128>}, {transform_indices = @transform_2, window_bounds = array<i64: 24, 1>}, {transform_indices = @transform_3, window_bounds = array<i64: 1, 1>}]} {
    %c0_i32 = arith.constant 0 : i32
    %0 = arith.cmpi eq, %arg0, %c0_i32 : i32
    %1 = arith.extui %0 : i1 to i32
    %c0_i32_0 = arith.constant 0 : i32
    %2 = arith.cmpi ne, %1, %c0_i32_0 : i32
    scf.if %2 {
      %cst_12 = arith.constant 0.000000e+00 : f32
      %c0_13 = arith.constant 0 : index
      %c0_14 = arith.constant 0 : index
      %25 = memref.load %arg4[%c0_13, %c0_14] : memref<1x1xf32, #tpu.memory_space<smem>>
      memref.store %cst_12, %arg4[%c0_13, %c0_14] : memref<1x1xf32, #tpu.memory_space<smem>>
    } else {
    }
    %c0 = arith.constant 0 : index
    %c0_1 = arith.constant 0 : index
    %3 = vector.load %arg1[%c0, %c0_1] : memref<24x128xf32, #tpu.memory_space<vmem>>, vector<24x128xf32>
    %c0_2 = arith.constant 0 : index
    %c0_3 = arith.constant 0 : index
    %4 = vector.load %arg2[%c0_2, %c0_3] : memref<24x128xf32, #tpu.memory_space<vmem>>, vector<24x128xf32>
    %c0_4 = arith.constant 0 : index
    %c0_5 = arith.constant 0 : index
    %5 = vector.load %arg3[%c0_4, %c0_5] : memref<24x1xf32, #tpu.memory_space<vmem>>, vector<24x1xf32>
    %cst = arith.constant 0.000000e+00 : f32
    %6 = vector.broadcast %cst : f32 to vector<24x128xf32>
    %7 = arith.maximumf %3, %6 : vector<24x128xf32>
    %8 = arith.mulf %3, %4 : vector<24x128xf32>
    %9 = arith.subf %7, %8 : vector<24x128xf32>
    %10 = math.absf %3 : vector<24x128xf32>
    %cst_6 = arith.constant 0.000000e+00 : f32
    %11 = vector.broadcast %cst_6 : f32 to vector<24x128xf32>
    %12 = arith.subf %11, %10 : vector<24x128xf32>
    %13 = math.exp %12 : vector<24x128xf32>
    %14 = math.log1p %13 : vector<24x128xf32>
    %15 = arith.addf %9, %14 : vector<24x128xf32>
    %c0_7 = arith.constant 0 : index
    %c0_8 = arith.constant 0 : index
    %16 = memref.load %arg4[%c0_7, %c0_8] : memref<1x1xf32, #tpu.memory_space<smem>>
    %17 = vector.broadcast %5 : vector<24x1xf32> to vector<24x128xf32>
    %18 = arith.mulf %15, %17 : vector<24x128xf32>
    %19 = vector.shape_cast %18 : vector<24x128xf32> to vector<1x24x128xf32>
    %cst_9 = arith.constant dense<0.000000e+00> : vector<1xf32>
    %20 = vector.multi_reduction <add>, %19, %cst_9 [1, 2] : vector<1x24x128xf32> to vector<1xf32>
    %21 = vector.shape_cast %20 : vector<1xf32> to vector<1x1x1xf32>
    %22 = vector.extract %21[0, 0, 0] : f32 from vector<1x1x1xf32>
    %23 = arith.addf %16, %22 : f32
    %c0_10 = arith.constant 0 : index
    %c0_11 = arith.constant 0 : index
    %24 = memref.load %arg4[%c0_10, %c0_11] : memref<1x1xf32, #tpu.memory_space<smem>>
    memref.store %23, %arg4[%c0_10, %c0_11] : memref<1x1xf32, #tpu.memory_space<smem>>
    return
  }
  func.func @transform_0(%arg0: i32) -> (i32, i32) {
    %c0_i32 = arith.constant 0 : i32
    %c0_i32_0 = arith.constant 0 : i32
    return %arg0, %c0_i32 : i32, i32
  }
  func.func @transform_1(%arg0: i32) -> (i32, i32) {
    %c0_i32 = arith.constant 0 : i32
    %c0_i32_0 = arith.constant 0 : i32
    return %arg0, %c0_i32 : i32, i32
  }
  func.func @transform_2(%arg0: i32) -> (i32, i32) {
    %c0_i32 = arith.constant 0 : i32
    %c0_i32_0 = arith.constant 0 : i32
    return %arg0, %c0_i32 : i32, i32
  }
  func.func @transform_3(%arg0: i32) -> (i32, i32) {
    %c0_i32 = arith.constant 0 : i32
    %c0_i32_0 = arith.constant 0 : i32
    %c0_i32_1 = arith.constant 0 : i32
    return %c0_i32, %c0_i32_0 : i32, i32
  }
}

</mosaic_0001>

<bundles_post_ra>
// kernel: wbce_loss.1
= control target key start
LH: loop header
LB: loop body
LE: loop exit
PB: predicated region body
PF: predicated region fallthrough
CT: control target
= control target key end

     0   :  { %v162_v2 = vmov 0   ;;  %s214_s0 = inlined_call_operand.vmem [shape: f32[24,128], index: 0, kind: input, shape index: {}]   ;;  %s215_s1 = inlined_call_operand.vmem [shape: f32[24,128], index: 1, kind: input, shape index: {}]   ;;  %s216_s2 = inlined_call_operand.vmem [shape: f32[24,1], index: 2, kind: input, shape index: {}]   ;;  %s217_s3 = inlined_call_operand.hbm [shape: f32[1,1], index: 3, kind: output, shape index: {}]  }
   0x1   :  { %v27_v0 = vld [vmem:[%s216_s2] sm:$0xff]  ;;  %v29_v1 = vld [vmem:[%s216_s2 + $0x10] sm:$0xff]  ;;  %134 = vset.pattern.permute.xlu0 %v162_v2  ;;  %135 = vset.pattern.permute.xlu1 %v162_v2 }
   0x2   :  { %8 = vsyncpa [#allocation3], 0  ;;  %84 = vperm.xlu0 %134, %v27_v0   ;;  %94 = vperm.xlu1 %135, %v29_v1   ;;  %v28_v3 = vld [vmem:[%s216_s2 + $0x8] sm:$0xff]  ;;  %v21_v4 = vld [vmem:[%s214_s0] sm:$0xff]  ;;  %s119_s29 = sshll.u32 %s217_s3, 4  ;;  %s163_s4 = smov [#allocation2]   ;;  %s120_s29 = int_to_ptr.hbm [resolvable:$true] %s119_s29 }
   0x3   :  { %v22_v5 = vld [vmem:[%s214_s0 + $0x8] sm:$0xff]  ;;  %v23_v6 = vld [vmem:[%s214_s0 + $0x10] sm:$0xff]  ;;  %v39_v7 = vand.u32 2147483647, %v21_v4  ;;  %v24_v27 = vld [vmem:[%s215_s1] sm:$0xff]  ;;  %v30_v37 = vmax.f32 %v21_v4, 0.0 }
   0x4   :  { %v40_v8 = vand.u32 2147483647, %v22_v5  ;;  %v41_v9 = vand.u32 2147483647, %v23_v6  ;;  %v25_v29 = vld [vmem:[%s215_s1 + $0x8] sm:$0xff]  ;;  %v26_v31 = vld [vmem:[%s215_s1 + $0x10] sm:$0xff]  ;;  %v33_v38 = vmul.f32 %v24_v27, %v21_v4 }
   0x5   :  { %v42_v10 = vsub.f32 0.0, %v39_v7  ;;  %v31_v41 = vmax.f32 %v22_v5, 0.0  ;;  %v34_v42 = vmul.f32 %v25_v29, %v22_v5  ;;  %v32_v43 = vmax.f32 %v23_v6, 0.0 }
   0x6   :  { %v43_v11 = vsub.f32 0.0, %v40_v8  ;;  %v44_v12 = vsub.f32 0.0, %v41_v9  ;;  %v35_v44 = vmul.f32 %v26_v31, %v23_v6  ;;  %v36_v50 = vsub.f32 %v30_v37, %v33_v38 }
   0x7   :  { %v45_v13 = vmul.f32 1.442695, %v42_v10  ;;  %v37_v51 = vsub.f32 %v31_v41, %v34_v42 }
   0x8   :  { %v47_v14 = vmul.f32 1.442695, %v43_v11  ;;  %v49_v15 = vmul.f32 1.442695, %v44_v12  ;;  %v38_v52 = vsub.f32 %v32_v43, %v35_v44 }
   0x9   :  { %136 = vpow2.f32 %v45_v13 }
   0xa   :  { %89 = vperm.xlu0 %134, %v28_v3   ;;  %138 = vpow2.f32 %v47_v14 }
   0xb   :  { %140 = vpow2.f32 %v49_v15 }
   0xf   :  { %v137_v16 = vpop.eup %136 }
  0x10   :  { %v139_v17 = vpop.eup %138  ;;  %v51_v19 = vadd.f32 1.0, %v137_v16  ;;  %v54_v22 = vmul.f32 -0.5, %v137_v16  ;;  %v57_v34 = vand.u32 2147483647, %v137_v16 }
  0x11   :  { %v141_v18 = vpop.eup %140  ;;  %v60_v20 = vadd.f32 1.0, %v139_v17  ;;  %v63_v23 = vmul.f32 -0.5, %v139_v17  ;;  %v66_v35 = vand.u32 2147483647, %v139_v17 }
  0x12   :  { %v69_v21 = vadd.f32 1.0, %v141_v18  ;;  %142 = vlog2.f32 %v51_v19  ;;  %v72_v24 = vmul.f32 -0.5, %v141_v18  ;;  %v55_v25 = vadd.f32 1.0, %v54_v22 }
  0x13   :  { %144 = vlog2.f32 %v60_v20  ;;  %v64_v30 = vadd.f32 1.0, %v63_v23  ;;  %v75_v36 = vand.u32 2147483647, %v141_v18  ;;  %vm58_vm0 = vcmp.lt.f32.partialorder %v57_v34, 0.0004427343 }
  0x14   :  { %146 = vlog2.f32 %v69_v21  ;;  %v73_v32 = vadd.f32 1.0, %v72_v24  ;;  %v56_v40 = vmul.f32 %v137_v16, %v55_v25  ;;  %vm67_vm1 = vcmp.lt.f32.partialorder %v66_v35, 0.0004427343 }
  0x15   :  { %v65_v46 = vmul.f32 %v139_v17, %v64_v30  ;;  %vm76_vm2 = vcmp.lt.f32.partialorder %v75_v36, 0.0004427343 }
  0x16   :  { %v74_v48 = vmul.f32 %v141_v18, %v73_v32 }
  0x18   :  { %v143_v26 = vpop.eup %142 }
  0x19   :  { %v145_v28 = vpop.eup %144  ;;  %v53_v39 = vmul.f32 0.6931472, %v143_v26 }
  0x1a   :  { %v147_v33 = vpop.eup %146  ;;  %v62_v45 = vmul.f32 0.6931472, %v145_v28 }
  0x1b   :  { %v71_v47 = vmul.f32 0.6931472, %v147_v33  ;;  %v59_v53 = vsel %vm58_vm0, %v56_v40, %v53_v39 }
  0x1c   :  { %v68_v54 = vsel %vm67_vm1, %v65_v46, %v62_v45  ;;  %v78_v56 = vadd.f32 %v59_v53, %v36_v50 }
  0x1d   :  { %v77_v55 = vsel %vm76_vm2, %v74_v48, %v71_v47  ;;  %v79_v57 = vadd.f32 %v68_v54, %v37_v51 }
  0x1e   :  { %v80_v58 = vadd.f32 %v77_v55, %v38_v52 }
  0x74   :  { %v85_v49 = vpop.permute.xlu0 %84  ;;  %v95_v59 = vpop.permute.xlu1 %94 }
  0x75   :  { %v97_v61 = vmul.f32 %v85_v49, %v78_v56  ;;  %v99_v63 = vmul.f32 %v95_v59, %v80_v58 }
  0x7c   :  { %v90_v60 = vpop.permute.xlu0 %89 }
  0x7d   :  { %v98_v62 = vmul.f32 %v90_v60, %v79_v57 }
  0x7f   :  { %v100_v0 = vadd.f32 %v98_v62, %v97_v61 }
  0x81   :  { %v101_v1 = vadd.f32 %v100_v0, %v99_v63 }
  0x83   :  { %102 = vadd.xlane.f32.xlu1 %v101_v1 }
  0xf6   :  { %v103_v2 = vpop.xlane.xlu1 %102 }
  0xf7   :  { %v104_v3 = vrot.slane %v103_v2, 4 }
  0xf9   :  { %v105_v4 = vadd.f32 %v104_v3, %v103_v2 }
  0xfb   :  { %v106_v5 = vrot.slane %v105_v4, 2 }
  0xfd   :  { %v107_v6 = vadd.f32 %v106_v5, %v105_v4 }
  0xff   :  { %v108_v7 = vrot.slane %v107_v6, 1 }
 0x101   :  { %v109_v8 = vadd.f32 %v108_v7, %v107_v6 }
 0x103   :  { %129 = vpush %v109_v8 }
 0x134   :  { %s130_s30 = spop %129 }
 0x135   :  { %113 = sst [smem:[#allocation2]] %s130_s30 }
 0x136   :  { %122 = dma.smem_to_hbm %s163_s4, 16, %s120_s29, [#allocation3]  }
 0x137   :  { %160 = dma.done.wait [#allocation3], 16  }
 0x138   :  { %161 = vsyncadd [#allocation3], 4294967280 }
 0x139   :  { %127 = sfence }
 0x13a   :  { %128 = vsyncpa [#allocation3], 1 }

</bundles_post_ra>
